<compile_context>
chip_gen: v6e
topology: v6e:2x2x1
jax: 0.10.0
libtpu: 0.0.40
codegen_flags: <defaults>
</compile_context>

<pallas_src>
import jax
import jax.numpy as jnp
from jax.experimental import pallas as pl
from jax.experimental.pallas import tpu as pltpu


LANE = 128


def _round_up(x, m):
    return (x + m - 1) // m * m


def _cdiv(a, b):
    return -(-a // b)


def _vmem_capacity_bytes():
    """Physical VMEM per TensorCore, with a v7x-safe fallback."""
    try:
        info = pltpu.get_tpu_info()
        cap = getattr(info, "vmem_capacity_bytes", None)
        if cap:
            return int(cap)
    except Exception:
        pass
    return 64 * 1024 * 1024


def _balanced_tile(total, cap, align):
    """Largest aligned tile <= cap splitting `total` into near-equal blocks.
    If total <= cap, use the full extent (always a legal block dim)."""
    if total <= cap:
        return total
    n = _cdiv(total, cap)
    t = _round_up(_cdiv(total, n), align)
    return min(t, cap)


def decoder_kernel(x_ref, m_ref, w_ref, out_ref):
    """One grid step = one (row-tile, vocab-tile) of the flattened projection.

    Grid = (n_v, n_m) — vocab outermost so the (H, tv) weight tile is DMA'd once
    and reused across every row tile.

    x_ref   : VMEM (tm, H)   flattened encoder rows
    m_ref   : VMEM (tm, 1)   0/1 sequence mask for those rows
    w_ref   : VMEM (H, tv)   projection weight tile
    out_ref : VMEM (tm, tv)  logits tile
    """
    # Input-side masking: for a bias-free projection, zero rows -> zero logits,
    # and it is tm*H VPU work instead of tm*tv on the output.
    x = x_ref[...] * m_ref[...]
    out_ref[...] = jnp.dot(x, w_ref[...],
                           preferred_element_type=jnp.float32).astype(out_ref.dtype)


def decoder_forward(encoder_padded_outputs, encoder_input_lengths, weight_hv,
                    masking=True, compute_dtype=None, out_dtype=None,
                    tm=None, tv=None):
    """Pallas wrapper.

    encoder_padded_outputs : [N, Ti, H] float
    encoder_input_lengths  : [N]        int
    weight_hv              : [H, V]     float   (== PyTorch weight.T)
    compute_dtype          : optional dtype for x/W (e.g. jnp.bfloat16)
    out_dtype              : logits dtype (default: bf16 if compute is bf16, else f32)
    Returns (logits [N, Ti, V], len_logits [N]).
    """
    x3 = encoder_padded_outputs
    w = weight_hv
    N, Ti, H = x3.shape
    Hw, V = w.shape
    assert Hw == H, "weight must be [H, V]"

    if compute_dtype is not None:
        x3 = x3.astype(compute_dtype)
        w = w.astype(compute_dtype)
    in_dtype = x3.dtype
    if out_dtype is None:
        out_dtype = (jnp.bfloat16 if in_dtype == jnp.dtype(jnp.bfloat16)
                     else jnp.float32)

    in_item = jnp.dtype(in_dtype).itemsize
    out_item = jnp.dtype(out_dtype).itemsize

    # Flatten (N, Ti) -> M rows (free bitcast reshape on contiguous layout).
    M = N * Ti
    x = x3.reshape(M, H)

    # Tiny (M, 1) 0/1 mask (1/H of the x read; negligible HBM). masking=False ->
    # all ones; ragged-edge garbage rows are dropped by Pallas' masked output store.
    if masking:
        valid = (jnp.arange(Ti, dtype=jnp.int32)[None, :]
                 < encoder_input_lengths.astype(jnp.int32)[:, None])
        mask = valid.reshape(M, 1).astype(in_dtype)
    else:
        mask = jnp.ones((M, 1), dtype=in_dtype)

    # --- tile selection (budget-driven, per-chip) ---------------------------
    sub = 16 if in_dtype == jnp.dtype(jnp.bfloat16) else 8
    if tm is None:
        tm = _balanced_tile(M, 256, sub)

    vmem_cap = _vmem_capacity_bytes()
    budget = (vmem_cap * 3) // 4          # ~96 MiB on v5e/v6e, ~48 MiB on v7x

    if tv is None:
        fixed = 2 * tm * (H + 1) * in_item                        # x + mask (dbl-buf)
        per_tv = 2 * H * in_item + 2 * tm * out_item + tm * 4     # w, out, f32 acc
        tv_cap = max(LANE, ((budget - fixed) // per_tv) // LANE * LANE)
        tv_cap = min(tv_cap, 8192)
        tv = _balanced_tile(V, tv_cap, LANE)

    n_m = _cdiv(M, tm)
    n_v = _cdiv(V, tv)
    grid = (n_v, n_m)     # vocab outermost: weight block index changes least often

    need = (2 * tm * (H + 1) * in_item + 2 * H * tv * in_item
            + 2 * tm * tv * out_item + tm * tv * 4)
    vmem_limit = int(min(budget, max(2 * need, 16 * 1024 * 1024)))

    cost = pl.CostEstimate(
        flops=2 * M * H * V,
        transcendentals=0,
        bytes_accessed=(n_v * M * (H + 1) * in_item   # x + mask streamed per vocab tile
                        + H * V * in_item             # weight read once overall
                        + M * V * out_item),          # logits write
    )

    logits2d = pl.pallas_call(
        decoder_kernel,
        out_shape=jax.ShapeDtypeStruct((M, V), out_dtype),
        grid_spec=pltpu.PrefetchScalarGridSpec(
            num_scalar_prefetch=0,
            grid=grid,
            in_specs=[
                pl.BlockSpec((tm, H), lambda j, m: (m, 0)),
                pl.BlockSpec((tm, 1), lambda j, m: (m, 0)),
                pl.BlockSpec((H, tv), lambda j, m: (0, j)),
            ],
            out_specs=pl.BlockSpec((tm, tv), lambda j, m: (m, j)),
        ),
        compiler_params=pltpu.CompilerParams(
            dimension_semantics=("parallel", "parallel"),
            vmem_limit_bytes=vmem_limit,
        ),
        cost_estimate=cost,
    )(x, mask, w)

    logits = logits2d.reshape(N, Ti, V)   # free reshape
    return logits, encoder_input_lengths


def xavier_normal(key, out_features, in_features):
    """Deterministic xavier_normal_ equivalent for nn.Linear weight [V, H]."""
    std = jnp.sqrt(2.0 / (in_features + out_features))
    return std * jax.random.normal(key, (out_features, in_features), jnp.float32)


if __name__ == "__main__":
    # Small shapes consistent with the module's forward: N x Ti x H -> N x Ti x V.
    N, Ti, H, V = 2, 16, 32, 128

    key = jax.random.PRNGKey(0)
    k_x, k_w = jax.random.split(key)

    encoder_padded_outputs = jax.random.normal(k_x, (N, Ti, H), jnp.float32)
    encoder_input_lengths = jnp.array([12, 16], dtype=jnp.int32)

    # nn.Linear(d_input=H, n_tgt_vocab=V, bias=False) weight is [V, H]; xavier-normal.
    w_vh = xavier_normal(k_w, V, H)
    w_hv = w_vh.T  # kernel layout [H, V]

    # --- f32 path: matches the PyTorch forward exactly ---
    logits, len_logits = decoder_forward(
        encoder_padded_outputs, encoder_input_lengths, w_hv, masking=True)
    logits = jax.block_until_ready(logits)

    ref = jnp.einsum("nth,hv->ntv", encoder_padded_outputs, w_hv)
    mask = (jnp.arange(Ti)[None, :] < encoder_input_lengths[:, None]).astype(jnp.float32)
    ref = ref * mask[:, :, None]

    assert logits.shape == (N, Ti, V)
    assert logits.dtype == jnp.float32
    assert jnp.allclose(logits, ref, atol=1e-5, rtol=1e-5), "f32 mismatch vs reference"
    assert jnp.array_equal(len_logits, encoder_input_lengths)

    # --- masking=False path ---
    logits_nm, _ = decoder_forward(
        encoder_padded_outputs, encoder_input_lengths, w_hv, masking=False)
    logits_nm = jax.block_until_ready(logits_nm)
    ref_nm = jnp.einsum("nth,hv->ntv", encoder_padded_outputs, w_hv)
    assert jnp.allclose(logits_nm, ref_nm, atol=1e-5, rtol=1e-5), "unmasked mismatch"

    # --- bf16 fast path (f32 MXU accumulation, bf16 logits by default) ---
    logits_bf16, _ = decoder_forward(
        encoder_padded_outputs, encoder_input_lengths, w_hv, masking=True,
        compute_dtype=jnp.bfloat16)
    logits_bf16 = jax.block_until_ready(logits_bf16)
    assert logits_bf16.dtype == jnp.bfloat16

    x_bf = encoder_padded_outputs.astype(jnp.bfloat16).astype(jnp.float32)
    w_bf = w_hv.astype(jnp.bfloat16).astype(jnp.float32)
    ref_bf = jnp.einsum("nth,hv->ntv", x_bf, w_bf) * mask[:, :, None]
    assert jnp.allclose(logits_bf16.astype(jnp.float32), ref_bf,
                        atol=2e-2, rtol=2e-2), "bf16 mismatch vs bf16 reference"

    print("KERNEL_OK")
</pallas_src>

<mosaic_0001>
module attributes {stable_mosaic.version = 11 : i64} {
  func.func @decoder_kernel(%arg0: i32, %arg1: i32, %arg2: memref<32x32xf32, #tpu.memory_space<vmem>>, %arg3: memref<32x1xf32, #tpu.memory_space<vmem>>, %arg4: memref<32x128xf32, #tpu.memory_space<vmem>>, %arg5: memref<32x128xf32, #tpu.memory_space<vmem>>) attributes {dimension_semantics = [#tpu.dimension_semantics<parallel>, #tpu.dimension_semantics<parallel>], iteration_bounds = array<i64: 1, 1>, scalar_prefetch = 0 : i64, scratch_operands = 0 : i64, tpu.core_type = #tpu.core_type<tc>, window_params = [{transform_indices = @transform_0, window_bounds = array<i64: 32, 32>}, {transform_indices = @transform_1, window_bounds = array<i64: 32, 1>}, {transform_indices = @transform_2, window_bounds = array<i64: 32, 128>}, {transform_indices = @transform_3, window_bounds = array<i64: 32, 128>}]} {
    %c0 = arith.constant 0 : index
    %c0_0 = arith.constant 0 : index
    %0 = vector.load %arg2[%c0, %c0_0] : memref<32x32xf32, #tpu.memory_space<vmem>>, vector<32x32xf32>
    %c0_1 = arith.constant 0 : index
    %c0_2 = arith.constant 0 : index
    %1 = vector.load %arg3[%c0_1, %c0_2] : memref<32x1xf32, #tpu.memory_space<vmem>>, vector<32x1xf32>
    %2 = vector.broadcast %1 : vector<32x1xf32> to vector<32x32xf32>
    %3 = arith.mulf %0, %2 : vector<32x32xf32>
    %c0_3 = arith.constant 0 : index
    %c0_4 = arith.constant 0 : index
    %4 = vector.load %arg4[%c0_3, %c0_4] : memref<32x128xf32, #tpu.memory_space<vmem>>, vector<32x128xf32>
    %cst = arith.constant dense<0.000000e+00> : vector<32x128xf32>
    %5 = tpu.matmul %3, %4, %cst {dimension_numbers = #tpu.dot_dimension_numbers<[1], [0], [0], [1], [0, 0, 1, 1], [], []>} : vector<32x32xf32>, vector<32x128xf32>, vector<32x128xf32> -> vector<32x128xf32>
    %c0_5 = arith.constant 0 : index
    %c0_6 = arith.constant 0 : index
    %6 = vector.load %arg5[%c0_5, %c0_6] : memref<32x128xf32, #tpu.memory_space<vmem>>, vector<32x128xf32>
    tpu.vector_store %arg5[%c0_5, %c0_6], %5 {strides = array<i32>} : memref<32x128xf32, #tpu.memory_space<vmem>>, vector<32x128xf32>,
    return
  }
  func.func @transform_0(%arg0: i32, %arg1: i32) -> (i32, i32) {
    %c0_i32 = arith.constant 0 : i32
    %c0_i32_0 = arith.constant 0 : i32
    return %arg1, %c0_i32 : i32, i32
  }
  func.func @transform_1(%arg0: i32, %arg1: i32) -> (i32, i32) {
    %c0_i32 = arith.constant 0 : i32
    %c0_i32_0 = arith.constant 0 : i32
    return %arg1, %c0_i32 : i32, i32
  }
  func.func @transform_2(%arg0: i32, %arg1: i32) -> (i32, i32) {
    %c0_i32 = arith.constant 0 : i32
    %c0_i32_0 = arith.constant 0 : i32
    return %c0_i32, %arg0 : i32, i32
  }
  func.func @transform_3(%arg0: i32, %arg1: i32) -> (i32, i32) {
    %c0_i32 = arith.constant 0 : i32
    return %arg1, %arg0 : i32, i32
  }
}

</mosaic_0001>

<bundles_post_ra>
// kernel: tpu_custom_call.1
= control target key start
LH: loop header
LB: loop body
LE: loop exit
PB: predicated region body
PF: predicated region fallthrough
CT: control target
= control target key end

     0   :  { %8 = vsyncpa [#allocation3], 0  ;;  %s330_s0 = inlined_call_operand.vmem [shape: f32[32,32], index: 0, kind: input, shape index: {}]   ;;  %s331_s1 = inlined_call_operand.vmem [shape: f32[32,1], index: 1, kind: input, shape index: {}]   ;;  %s332_s2 = inlined_call_operand.hbm [shape: f32[32,128], index: 2, kind: input, shape index: {}]   ;;  %s333_s3 = inlined_call_operand.hbm [shape: f32[32,128], index: 3, kind: output, shape index: {}]  }
   0x1   :  { %9 = vsyncpa [#allocation4], 0  ;;  %s269_s12 = smov [#allocation2]  }
   0x2   :  { %s19_s13 = sshll.u32 %s269_s12, 4  ;;  %s20_s13 = int_to_ptr.vmem [resolvable:$true] %s19_s13 }
   0x3   :  { %s233_s14 = scalar_lea.vmem %s20_s13, 512  ;;  %p238_p1 = scmp.lt.s32.totalorder %s20_s13, %s20_s13 }
   0x4   :  { %p234_p0 = scmp.ne.s32.totalorder %s20_s13, %s233_s14  ;;  %p239_p2 = scmp.lt.s32.totalorder %s233_s14, %s233_s14 }
   0x6   :  { %p240_p3 = por %p239_p2, %p238_p1 }
   0x8   :  { %p241_p4 = pnand %p240_p3, %p234_p0 }
   0xa   :  { %244 = shalt.err (!%p241_p4)
}
   0xb   :  { %s270_s15 = smov 128   ;;  %s271_s16 = smov 8  }
   0xc   :  { %25 = dma.hbm_to_vmem [thread:$0]  %s332_s2, 512, %s20_s13, [#allocation3], %s270_s15, %s270_s15, %s271_s16  }
   0xd   :  { %265 = dma.done.wait [#allocation3], 512  }
   0xe   :  { %266 = vsyncadd [#allocation3], 4294966784  ;;  %v272_v0 = vmov 0   ;;  %v34_v1 = vld [vmem:[%s331_s1 + $0x8] sm:$0xff]  ;;  %v33_v2 = vld [vmem:[%s331_s1] sm:$0xff]  ;;  %vm65_vm0 = vcmask 261120  }
   0xf   :  { %224 = vset.pattern.permute.xlu1 %v272_v0  ;;  %223 = vset.pattern.permute.xlu0 %v272_v0  ;;  %v64_v3 = vld [vmem:[#allocation2 + $0x18] sm:$0xff]  ;;  %v63_v4 = vld [vmem:[#allocation2 + $0x10] sm:$0xff]  ;;  %v62_v7 = vld [vmem:[#allocation2 + $0x8] sm:$0xff]  ;;  %s273_s6 = smov [#allocation5]  }
  0x10   :  { %44 = vperm.xlu1 %224, %v34_v1   ;;  %39 = vperm.xlu0 %223, %v33_v2   ;;  %v36_v5 = vld [vmem:[%s331_s1 + $0x18] sm:$0xff]  ;;  %v35_v6 = vld [vmem:[%s331_s1 + $0x10] sm:$0xff]  ;;  %v61_v8 = vld [vmem:[#allocation2] sm:$0xff]  ;;  %s172_s7 = sshll.u32 %s273_s6, 4  ;;  %s173_s7 = int_to_ptr.vmem [resolvable:$true] %s172_s7 }
  0x11   :  { %196 = vmatprep.subr.mxu0 %v64_v3  ;;  %210 = vmatprep.subr.mxu1 %v64_v3  ;;  %v30_v9 = vld [vmem:[%s330_s0 + $0x8] sm:$0xff]  ;;  %v29_v10 = vld [vmem:[%s330_s0] sm:$0xff]  ;;  %v32_v15 = vld [vmem:[%s330_s0 + $0x18] sm:$0xff]  ;;  %p250_p6 = scmp.lt.s32.totalorder %s173_s7, %s173_s7 }
  0x12   :  { %197 = vmatpush3.msra.mxu0 %v64_v3  ;;  %214 = vmatpush3.msra.mxu1 %v64_v3  ;;  %v31_v16 = vld [vmem:[%s330_s0 + $0x10] sm:$0xff]  ;;  %s245_s0 = scalar_lea.vmem %s173_s7, 512 }
  0x13   :  { %198 = vmatprep.subr.mxu0 %v63_v4  ;;  %211 = vmatprep.subr.mxu1 %v63_v4  ;;  %p246_p5 = scmp.ne.s32.totalorder %s173_s7, %s245_s0  ;;  %p251_p7 = scmp.lt.s32.totalorder %s245_s0, %s245_s0 }
  0x14   :  { %54 = vperm.xlu1 %224, %v36_v5   ;;  %49 = vperm.xlu0 %223, %v35_v6  }
  0x15   :  { %199 = vmatpush3.msra.mxu0 %v63_v4  ;;  %215 = vmatpush3.msra.mxu1 %v63_v4  ;;  %p252_p8 = por %p251_p7, %p250_p6 }
  0x16   :  { %200 = vmatprep.subr.mxu0 %v62_v7  ;;  %212 = vmatprep.subr.mxu1 %v62_v7 }
  0x17   :  { %201 = vmatpush3.msra.mxu0 %v62_v7  ;;  %216 = vmatpush3.msra.mxu1 %v62_v7  ;;  %p253_p9 = pnand %p252_p8, %p246_p5 }
  0x18   :  { %202 = vmatprep.subr.mxu0 %v61_v8  ;;  %213 = vmatprep.subr.mxu1 %v61_v8 }
  0x19   :  { %203 = vmatpush3.msra.mxu0 %v61_v8  ;;  %217 = vmatpush3.msra.mxu1 %v61_v8 }
  0x8b   :  { %v45_v11 = vpop.permute.xlu1 %44  ;;  %v40_v12 = vpop.permute.xlu0 %39 }
  0x8c   :  { %v58_v13 = vmul.f32 %v45_v11, %v30_v9  ;;  %v57_v14 = vmul.f32 %v40_v12, %v29_v10 }
  0x8e   :  { %204 = vmatprep.mubr.msk.f32.mxu0 %vm65_vm0, %v57_v14 }
  0x8f   :  { %v55_v17 = vpop.permute.xlu1 %54  ;;  %v50_v18 = vpop.permute.xlu0 %49  ;;  %205 = vmatmul.mubr.msk.f32.vlgmr.msra.gmra.mxu0 %vm65_vm0, %v58_v13 }
  0x90   :  { %v60_v19 = vmul.f32 %v55_v17, %v32_v15  ;;  %v59_v20 = vmul.f32 %v50_v18, %v31_v16 }
  0x92   :  { %207 = vmatprep.mubr.msk.f32.mxu1 %vm65_vm0, %v59_v20 }
  0x93   :  { %208 = vmatmul.mubr.msk.f32.vlgmr.msra.gmra.mxu1 %vm65_vm0, %v60_v19 }
 0x14f   :  { %v206_v21 = vpop.f32.mrf.mxu0 }
 0x150   :  { %164 = vst [vmem:[#allocation5 + $0x8] sm:$0xff] %v206_v21 }
 0x151   :  { %v144_v22 = vpop.f32.mrf.mxu0 }
 0x152   :  { %163 = vst [vmem:[#allocation5] sm:$0xff] %v144_v22 }
 0x153   :  { %v209_v23 = vpop.f32.mrf.mxu1 }
 0x154   :  { %166 = vst [vmem:[#allocation5 + $0x18] sm:$0xff] %v209_v23 }
 0x155   :  { %v154_v24 = vpop.f32.mrf.mxu1 }
 0x156   :  { %165 = vst [vmem:[#allocation5 + $0x10] sm:$0xff] %v154_v24 }
 0x157   :  { %256 = shalt.err (!%p253_p9)
}
 0x158   :  { %178 = dma.vmem_to_hbm [thread:$0]  %s173_s7, 512, %s333_s3, [#allocation4], %s270_s15, %s270_s15, %s271_s16  }
 0x159   :  { %267 = dma.done.wait [#allocation4], 512  }
 0x15a   :  { %268 = vsyncadd [#allocation4], 4294966784 }
 0x15b   :  { %182 = vsyncpa [#allocation3], 1 }
 0x15c   :  { %183 = vsyncpa [#allocation4], 1 }

</bundles_post_ra>
